<compile_context>
chip_gen: v5e
topology: v5e:2x2
jax: 0.10.0
libtpu: 0.0.40
codegen_flags: <defaults>
</compile_context>

<pallas_src>
import functools

import jax
import jax.numpy as jnp
from jax.experimental import pallas as pl
from jax.experimental.pallas import tpu as pltpu

_IN = 9   # board features == policy logits
_H = 16   # hidden width


def _mlp_policy_value_kernel(
    x_ref, w1_ref, b1_ref, w2_ref, b2_ref, wa_ref, ba_ref, wv_ref, bv_ref,
    pi_ref, v_ref,
):
    # x_ref: (9, TB) -- batch on lanes. Padded (zero) batch columns just produce
    # relu(bias) activations and a finite softmax; they are never read back by the
    # wrapper, so do NOT reduce across lanes here.
    xT = x_ref[...]

    # fc1 + relu : (16, 9) @ (9, TB) -> (16, TB)
    h1 = jnp.dot(w1_ref[...], xT, preferred_element_type=jnp.float32) + b1_ref[...]
    h1 = jnp.maximum(h1, 0.0)

    # fc2 + relu : (16, 16) @ (16, TB) -> (16, TB)
    h2 = jnp.dot(w2_ref[...], h1, preferred_element_type=jnp.float32) + b2_ref[...]
    h2 = jnp.maximum(h2, 0.0)

    # action head : (9, 16) @ (16, TB) -> (9, TB); softmax over the feature
    # (sublane) axis. Exact reciprocal to hold the 1e-5 tolerance.
    logits = jnp.dot(wa_ref[...], h2, preferred_element_type=jnp.float32) + ba_ref[...]
    m = jnp.max(logits, axis=0, keepdims=True)                       # (1, TB)
    e = jnp.exp(logits - m)
    pi_ref[...] = e * pl.reciprocal(jnp.sum(e, axis=0, keepdims=True), approx=False)

    # value head : (1, 16) @ (16, TB) -> (1, TB); tanh.
    vl = jnp.dot(wv_ref[...], h2, preferred_element_type=jnp.float32) + bv_ref[...]
    v_ref[...] = jnp.tanh(vl)


def _round_up(n, m):
    return ((n + m - 1) // m) * m


@functools.partial(jax.jit, static_argnames=("block_b",))
def mlp_policy_value(x, params, *, block_b=4096):
    """x: (B, 9) float32. Returns (pi (B, 9), v (B, 1)) matching the torch module."""
    B = x.shape[0]

    # Lane tile: multiple of 128 (lane-dense DMA + unmasked stores), capped at
    # block_b, and -- when the batch allows -- at half the padded batch so the grid
    # has >= 2 steps for v7x's two TensorCores. (No effect on v5e/v6e.)
    b128 = _round_up(max(B, 1), 128)
    tb = min(block_b, b128)
    if b128 > 128:
        tb = min(tb, _round_up(pl.cdiv(b128, 2), 128))
    grid_n = pl.cdiv(b128, tb)
    bp = grid_n * tb

    # Layout plumbing only: pad the batch and put it on the minor (lane) axis.
    x_t = jnp.pad(x, ((0, bp - B), (0, 0))).T                         # (9, bp)

    const = lambda i: (0, 0)   # weights / biases VMEM-resident across all steps
    cost = pl.CostEstimate(
        flops=2 * bp * (_IN * _H + _H * _H + _H * (_IN + 1)),
        transcendentals=bp * (_IN + 1),                               # exp + tanh
        bytes_accessed=4 * (bp * (_IN + _IN + 1)
                            + _H * _IN + _H + _H * _H + _H
                            + _IN * _H + _IN + _H + 1),
    )

    pi_t, v_t = pl.pallas_call(
        _mlp_policy_value_kernel,
        out_shape=(
            jax.ShapeDtypeStruct((_IN, bp), jnp.float32),             # pi^T
            jax.ShapeDtypeStruct((1, bp), jnp.float32),               # v^T
        ),
        grid=(grid_n,),
        in_specs=[
            pl.BlockSpec((_IN, tb), lambda i: (0, i)),                # x^T tiled on lanes
            pl.BlockSpec((_H, _IN), const),                           # w1 (16, 9)
            pl.BlockSpec((_H, 1), const),                             # b1 (16, 1)
            pl.BlockSpec((_H, _H), const),                            # w2 (16, 16)
            pl.BlockSpec((_H, 1), const),                             # b2 (16, 1)
            pl.BlockSpec((_IN, _H), const),                           # wa (9, 16)
            pl.BlockSpec((_IN, 1), const),                            # ba (9, 1)
            pl.BlockSpec((1, _H), const),                             # wv (1, 16)
            pl.BlockSpec((1, 1), const),                              # bv (1, 1)
        ],
        out_specs=(
            pl.BlockSpec((_IN, tb), lambda i: (0, i)),
            pl.BlockSpec((1, tb), lambda i: (0, i)),
        ),
        compiler_params=pltpu.CompilerParams(
            dimension_semantics=("parallel",),
        ),
        cost_estimate=cost,
    )(x_t, params["w1"], params["b1"], params["w2"], params["b2"],
      params["wa"], params["ba"], params["wv"], params["bv"])

    # Drop batch padding and return batch-major results (one fused slice+transpose each).
    return pi_t[:, :B].T, v_t[:, :B].T


def init_params(key):
    """Deterministic init; weights kept in torch (out, in) orientation, biases (out, 1)."""
    ks = jax.random.split(key, 8)

    def unif(k, shape, fan_in):
        bound = 1.0 / jnp.sqrt(fan_in)
        return jax.random.uniform(k, shape, jnp.float32, -bound, bound)

    return {
        "w1": unif(ks[0], (_H, _IN), 9.0),    # (16, 9)
        "b1": unif(ks[1], (_H, 1), 9.0),      # (16, 1)
        "w2": unif(ks[2], (_H, _H), 16.0),    # (16, 16)
        "b2": unif(ks[3], (_H, 1), 16.0),     # (16, 1)
        "wa": unif(ks[4], (_IN, _H), 16.0),   # (9, 16)
        "ba": unif(ks[5], (_IN, 1), 16.0),    # (9, 1)
        "wv": unif(ks[6], (1, _H), 16.0),     # (1, 16)
        "bv": unif(ks[7], (1, 1), 16.0),      # (1, 1)
    }


def _reference(x, p):
    h1 = jnp.maximum(x @ p["w1"].T + p["b1"].T, 0.0)
    h2 = jnp.maximum(h1 @ p["w2"].T + p["b2"].T, 0.0)
    logits = h2 @ p["wa"].T + p["ba"].T
    pi = jax.nn.softmax(logits, axis=1)
    v = jnp.tanh(h2 @ p["wv"].T + p["bv"].T)
    return pi, v


if __name__ == "__main__":
    key = jax.random.PRNGKey(0)
    k_param, k_x = jax.random.split(key)
    params = init_params(k_param)

    # Small inference-style batch (like Model.predict with a single 3x3 board).
    B = 2
    x = jax.random.normal(k_x, (B, _IN), jnp.float32)

    pi, v = mlp_policy_value(x, params)
    jax.block_until_ready((pi, v))

    pi_ref, v_ref = _reference(x, params)
    assert pi.shape == (B, _IN) and v.shape == (B, 1)
    assert jnp.allclose(pi, pi_ref, atol=1e-5, rtol=1e-5)
    assert jnp.allclose(v, v_ref, atol=1e-5, rtol=1e-5)
    assert jnp.allclose(jnp.sum(pi, axis=1), 1.0, atol=1e-5)

    # Larger, non-multiple-of-tile batch to exercise multiple grid steps / padding.
    B2 = 1030
    x2 = jax.random.normal(jax.random.PRNGKey(1), (B2, _IN), jnp.float32)
    pi2, v2 = mlp_policy_value(x2, params)
    jax.block_until_ready((pi2, v2))
    pi2_ref, v2_ref = _reference(x2, params)
    assert pi2.shape == (B2, _IN) and v2.shape == (B2, 1)
    assert jnp.allclose(pi2, pi2_ref, atol=1e-5, rtol=1e-5)
    assert jnp.allclose(v2, v2_ref, atol=1e-5, rtol=1e-5)

    print("KERNEL_OK")
</pallas_src>

<mosaic_0001>
module attributes {stable_mosaic.version = 11 : i64} {
  func.func @_mlp_policy_value_kernel(%arg0: i32, %arg1: memref<9x128xf32, #tpu.memory_space<vmem>>, %arg2: memref<16x9xf32, #tpu.memory_space<vmem>>, %arg3: memref<16x1xf32, #tpu.memory_space<vmem>>, %arg4: memref<16x16xf32, #tpu.memory_space<vmem>>, %arg5: memref<16x1xf32, #tpu.memory_space<vmem>>, %arg6: memref<9x16xf32, #tpu.memory_space<vmem>>, %arg7: memref<9x1xf32, #tpu.memory_space<vmem>>, %arg8: memref<1x16xf32, #tpu.memory_space<vmem>>, %arg9: memref<1x1xf32, #tpu.memory_space<vmem>>, %arg10: memref<9x128xf32, #tpu.memory_space<vmem>>, %arg11: memref<1x128xf32, #tpu.memory_space<vmem>>) attributes {dimension_semantics = [#tpu.dimension_semantics<parallel>], iteration_bounds = array<i64: 1>, scalar_prefetch = 0 : i64, scratch_operands = 0 : i64, tpu.core_type = #tpu.core_type<tc>, window_params = [{transform_indices = @transform_0, window_bounds = array<i64: 9, 128>}, {pipeline_mode = #tpu.pipeline_mode<synchronous>, transform_indices = @transform_1, window_bounds = array<i64: 16, 9>}, {pipeline_mode = #tpu.pipeline_mode<synchronous>, transform_indices = @transform_2, window_bounds = array<i64: 16, 1>}, {pipeline_mode = #tpu.pipeline_mode<synchronous>, transform_indices = @transform_3, window_bounds = array<i64: 16, 16>}, {pipeline_mode = #tpu.pipeline_mode<synchronous>, transform_indices = @transform_4, window_bounds = array<i64: 16, 1>}, {pipeline_mode = #tpu.pipeline_mode<synchronous>, transform_indices = @transform_5, window_bounds = array<i64: 9, 16>}, {pipeline_mode = #tpu.pipeline_mode<synchronous>, transform_indices = @transform_6, window_bounds = array<i64: 9, 1>}, {pipeline_mode = #tpu.pipeline_mode<synchronous>, transform_indices = @transform_7, window_bounds = array<i64: 1, 16>}, {pipeline_mode = #tpu.pipeline_mode<synchronous>, transform_indices = @transform_8, window_bounds = array<i64: 1, 1>}, {transform_indices = @transform_9, window_bounds = array<i64: 9, 128>}, {transform_indices = @transform_10, window_bounds = array<i64: 1, 128>}]} {
    %c0 = arith.constant 0 : index
    %c0_0 = arith.constant 0 : index
    %0 = vector.load %arg1[%c0, %c0_0] : memref<9x128xf32, #tpu.memory_space<vmem>>, vector<9x128xf32>
    %c0_1 = arith.constant 0 : index
    %c0_2 = arith.constant 0 : index
    %1 = vector.load %arg2[%c0_1, %c0_2] : memref<16x9xf32, #tpu.memory_space<vmem>>, vector<16x9xf32>
    %cst = arith.constant dense<0.000000e+00> : vector<16x128xf32>
    %2 = tpu.matmul %1, %0, %cst {dimension_numbers = #tpu.dot_dimension_numbers<[1], [0], [0], [1], [0, 0, 1, 1], [], []>} : vector<16x9xf32>, vector<9x128xf32>, vector<16x128xf32> -> vector<16x128xf32>
    %c0_3 = arith.constant 0 : index
    %c0_4 = arith.constant 0 : index
    %3 = vector.load %arg3[%c0_3, %c0_4] : memref<16x1xf32, #tpu.memory_space<vmem>>, vector<16x1xf32>
    %4 = vector.broadcast %3 : vector<16x1xf32> to vector<16x128xf32>
    %5 = arith.addf %2, %4 : vector<16x128xf32>
    %cst_5 = arith.constant 0.000000e+00 : f32
    %6 = vector.broadcast %cst_5 : f32 to vector<16x128xf32>
    %7 = arith.maximumf %5, %6 : vector<16x128xf32>
    %c0_6 = arith.constant 0 : index
    %c0_7 = arith.constant 0 : index
    %8 = vector.load %arg4[%c0_6, %c0_7] : memref<16x16xf32, #tpu.memory_space<vmem>>, vector<16x16xf32>
    %cst_8 = arith.constant dense<0.000000e+00> : vector<16x128xf32>
    %9 = tpu.matmul %8, %7, %cst_8 {dimension_numbers = #tpu.dot_dimension_numbers<[1], [0], [0], [1], [0, 0, 1, 1], [], []>} : vector<16x16xf32>, vector<16x128xf32>, vector<16x128xf32> -> vector<16x128xf32>
    %c0_9 = arith.constant 0 : index
    %c0_10 = arith.constant 0 : index
    %10 = vector.load %arg5[%c0_9, %c0_10] : memref<16x1xf32, #tpu.memory_space<vmem>>, vector<16x1xf32>
    %11 = vector.broadcast %10 : vector<16x1xf32> to vector<16x128xf32>
    %12 = arith.addf %9, %11 : vector<16x128xf32>
    %cst_11 = arith.constant 0.000000e+00 : f32
    %13 = vector.broadcast %cst_11 : f32 to vector<16x128xf32>
    %14 = arith.maximumf %12, %13 : vector<16x128xf32>
    %c0_12 = arith.constant 0 : index
    %c0_13 = arith.constant 0 : index
    %15 = vector.load %arg6[%c0_12, %c0_13] : memref<9x16xf32, #tpu.memory_space<vmem>>, vector<9x16xf32>
    %cst_14 = arith.constant dense<0.000000e+00> : vector<9x128xf32>
    %16 = tpu.matmul %15, %14, %cst_14 {dimension_numbers = #tpu.dot_dimension_numbers<[1], [0], [0], [1], [0, 0, 1, 1], [], []>} : vector<9x16xf32>, vector<16x128xf32>, vector<9x128xf32> -> vector<9x128xf32>
    %c0_15 = arith.constant 0 : index
    %c0_16 = arith.constant 0 : index
    %17 = vector.load %arg7[%c0_15, %c0_16] : memref<9x1xf32, #tpu.memory_space<vmem>>, vector<9x1xf32>
    %18 = vector.broadcast %17 : vector<9x1xf32> to vector<9x128xf32>
    %19 = arith.addf %16, %18 : vector<9x128xf32>
    %cst_17 = arith.constant dense<0xFF800000> : vector<128xf32>
    %20 = vector.multi_reduction <maximumf>, %19, %cst_17 [0] : vector<9x128xf32> to vector<128xf32>
    %21 = vector.shape_cast %20 : vector<128xf32> to vector<1x128xf32>
    %22 = vector.broadcast %21 : vector<1x128xf32> to vector<9x128xf32>
    %23 = arith.subf %19, %22 : vector<9x128xf32>
    %24 = math.exp %23 : vector<9x128xf32>
    %cst_18 = arith.constant dense<0.000000e+00> : vector<128xf32>
    %25 = vector.multi_reduction <add>, %24, %cst_18 [0] : vector<9x128xf32> to vector<128xf32>
    %26 = vector.shape_cast %25 : vector<128xf32> to vector<1x128xf32>
    %27 = tpu.reciprocal %26 : vector<1x128xf32> -> vector<1x128xf32>
    %28 = vector.broadcast %27 : vector<1x128xf32> to vector<9x128xf32>
    %29 = arith.mulf %24, %28 : vector<9x128xf32>
    %c0_19 = arith.constant 0 : index
    %c0_20 = arith.constant 0 : index
    %30 = vector.load %arg10[%c0_19, %c0_20] : memref<9x128xf32, #tpu.memory_space<vmem>>, vector<9x128xf32>
    tpu.vector_store %arg10[%c0_19, %c0_20], %29 {strides = array<i32>} : memref<9x128xf32, #tpu.memory_space<vmem>>, vector<9x128xf32>,
    %c0_21 = arith.constant 0 : index
    %c0_22 = arith.constant 0 : index
    %31 = vector.load %arg8[%c0_21, %c0_22] : memref<1x16xf32, #tpu.memory_space<vmem>>, vector<1x16xf32>
    %cst_23 = arith.constant dense<0.000000e+00> : vector<1x128xf32>
    %32 = tpu.matmul %31, %14, %cst_23 {dimension_numbers = #tpu.dot_dimension_numbers<[1], [0], [0], [1], [0, 0, 1, 1], [], []>} : vector<1x16xf32>, vector<16x128xf32>, vector<1x128xf32> -> vector<1x128xf32>
    %c0_24 = arith.constant 0 : index
    %c0_25 = arith.constant 0 : index
    %33 = vector.load %arg9[%c0_24, %c0_25] : memref<1x1xf32, #tpu.memory_space<vmem>>, vector<1x1xf32>
    %34 = vector.broadcast %33 : vector<1x1xf32> to vector<1x128xf32>
    %35 = arith.addf %32, %34 : vector<1x128xf32>
    %36 = math.tanh %35 : vector<1x128xf32>
    %c0_26 = arith.constant 0 : index
    %c0_27 = arith.constant 0 : index
    %37 = vector.load %arg11[%c0_26, %c0_27] : memref<1x128xf32, #tpu.memory_space<vmem>>, vector<1x128xf32>
    tpu.vector_store %arg11[%c0_26, %c0_27], %36 {strides = array<i32>} : memref<1x128xf32, #tpu.memory_space<vmem>>, vector<1x128xf32>,
    return
  }
  func.func @transform_0(%arg0: i32) -> (i32, i32) {
    %c0_i32 = arith.constant 0 : i32
    %c0_i32_0 = arith.constant 0 : i32
    return %c0_i32, %arg0 : i32, i32
  }
  func.func @transform_1(%arg0: i32) -> (i32, i32) {
    %c0_i32 = arith.constant 0 : i32
    %c0_i32_0 = arith.constant 0 : i32
    %c0_i32_1 = arith.constant 0 : i32
    return %c0_i32, %c0_i32_0 : i32, i32
  }
  func.func @transform_2(%arg0: i32) -> (i32, i32) {
    %c0_i32 = arith.constant 0 : i32
    %c0_i32_0 = arith.constant 0 : i32
    %c0_i32_1 = arith.constant 0 : i32
    return %c0_i32, %c0_i32_0 : i32, i32
  }
  func.func @transform_3(%arg0: i32) -> (i32, i32) {
    %c0_i32 = arith.constant 0 : i32
    %c0_i32_0 = arith.constant 0 : i32
    %c0_i32_1 = arith.constant 0 : i32
    return %c0_i32, %c0_i32_0 : i32, i32
  }
  func.func @transform_4(%arg0: i32) -> (i32, i32) {
    %c0_i32 = arith.constant 0 : i32
    %c0_i32_0 = arith.constant 0 : i32
    %c0_i32_1 = arith.constant 0 : i32
    return %c0_i32, %c0_i32_0 : i32, i32
  }
  func.func @transform_5(%arg0: i32) -> (i32, i32) {
    %c0_i32 = arith.constant 0 : i32
    %c0_i32_0 = arith.constant 0 : i32
    %c0_i32_1 = arith.constant 0 : i32
    return %c0_i32, %c0_i32_0 : i32, i32
  }
  func.func @transform_6(%arg0: i32) -> (i32, i32) {
    %c0_i32 = arith.constant 0 : i32
    %c0_i32_0 = arith.constant 0 : i32
    %c0_i32_1 = arith.constant 0 : i32
    return %c0_i32, %c0_i32_0 : i32, i32
  }
  func.func @transform_7(%arg0: i32) -> (i32, i32) {
    %c0_i32 = arith.constant 0 : i32
    %c0_i32_0 = arith.constant 0 : i32
    %c0_i32_1 = arith.constant 0 : i32
    return %c0_i32, %c0_i32_0 : i32, i32
  }
  func.func @transform_8(%arg0: i32) -> (i32, i32) {
    %c0_i32 = arith.constant 0 : i32
    %c0_i32_0 = arith.constant 0 : i32
    %c0_i32_1 = arith.constant 0 : i32
    return %c0_i32, %c0_i32_0 : i32, i32
  }
  func.func @transform_9(%arg0: i32) -> (i32, i32) {
    %c0_i32 = arith.constant 0 : i32
    %c0_i32_0 = arith.constant 0 : i32
    return %c0_i32, %arg0 : i32, i32
  }
  func.func @transform_10(%arg0: i32) -> (i32, i32) {
    %c0_i32 = arith.constant 0 : i32
    %c0_i32_0 = arith.constant 0 : i32
    return %c0_i32, %arg0 : i32, i32
  }
}

</mosaic_0001>

<bundles_post_ra>
// kernel: mlp_policy_value.1
= control target key start
LH: loop header
LB: loop body
LE: loop exit
PB: predicated region body
PF: predicated region fallthrough
CT: control target
= control target key end

     0   :  { %vm59_vm0 = vcmask 1040384   ;;  %v278_v0 = vmov 0   ;;  %vm52_vm1 = vcmask 72704   ;;  %vm102_vm2 = vcmask 130048   ;;  %s399_s2 = inlined_call_operand.vmem [shape: f32[16,1], index: 2, kind: input, shape index: {}]   ;;  %s400_s0 = inlined_call_operand.vmem [shape: f32[9,128], index: 0, kind: input, shape index: {}]   ;;  %s401_s1 = inlined_call_operand.vmem [shape: f32[16,9], index: 1, kind: input, shape index: {}]   ;;  %s402_s8 = inlined_call_operand.<no memory space> [shape: f32[1,1], index: 8, kind: input, shape index: {}]   ;;  %s403_s4 = inlined_call_operand.vmem [shape: f32[16,1], index: 4, kind: input, shape index: {}]   ;;  %s404_s3 = inlined_call_operand.vmem [shape: f32[16,16], index: 3, kind: input, shape index: {}]   ;;  %s405_s6 = inlined_call_operand.vmem [shape: f32[9,1], index: 6, kind: input, shape index: {}]   ;;  %s406_s5 = inlined_call_operand.vmem [shape: f32[9,16], index: 5, kind: input, shape index: {}]   ;;  %s407_s7 = inlined_call_operand.vmem [shape: f32[1,16], index: 7, kind: input, shape index: {}]   ;;  %s408_s10 = inlined_call_operand.vmem [shape: f32[1,128], index: 10, kind: output, shape index: {1}]   ;;  %s409_s9 = inlined_call_operand.vmem [shape: f32[9,128], index: 9, kind: output, shape index: {0}]  }
   0x1   :  { %267 = vset.pattern.permute.xlu0 %v278_v0  ;;  %v41_v1 = vld [vmem:[%s399_s2 + $0x8] sm:$0xff]  ;;  %v36_v3 = vld [vmem:[%s400_s0] sm:$0xff]  ;;  %v16_v4 = vstv %s402_s8  ;;  %268 = vset.pattern.permute.xlu1 %v278_v0 }
   0x2   :  { %v37_v2 = vld [vmem:[%s400_s0 + $0x8] sm:$0x1]  ;;  %49 = vperm.xlu0 %267, %v41_v1   ;;  %v38_v5 = vld [vmem:[%s401_s1] sm:$0xff]  ;;  %17 = vst [vmem:[#allocation2] sm:$0x1] %v16_v4  ;;  %269 = vset.pattern.permute.xlu2 %v278_v0 }
   0x3   :  { %258 = vmatpush.msk.msra.mxu0 %vm59_vm0, %v37_v2  ;;  %v40_v6 = vld [vmem:[%s399_s2] sm:$0xff]  ;;  %v39_v7 = vld [vmem:[%s401_s1 + $0x8] sm:$0xff] }
   0x4   :  { %v91_v9 = vld [vmem:[%s403_s4 + $0x8] sm:$0xff]  ;;  %v90_v10 = vld [vmem:[%s403_s4] sm:$0xff] }
   0x5   :  { %78 = vmatpush.msra.mxu0 %v36_v3  ;;  %99 = vperm.xlu1 %268, %v91_v9   ;;  %v88_v19 = vld [vmem:[%s404_s3] sm:$0xff]  ;;  %v89_v20 = vld [vmem:[%s404_s3 + $0x8] sm:$0xff] }
   0x6   :  { %259 = vmatmul.msk.f32.vlgmr.msra.gmra.mxu0 %vm52_vm1, %v38_v5  ;;  %v137_v21 = vld [vmem:[%s405_s6 + $0x8] sm:$0x1]  ;;  %v136_v23 = vld [vmem:[%s405_s6] sm:$0xff] }
   0x7   :  { %145 = vperm.xlu2 %269, %v137_v21   ;;  %v134_v31 = vld [vmem:[%s406_s5] sm:$0xff]  ;;  %v135_v33 = vld [vmem:[%s406_s5 + $0x8] sm:$0x1] }
   0x8   :  { %v217_v32 = vld [vmem:[%s407_s7] sm:$0x1] }
   0x9   :  { %v218_v8 = vld [vmem:[#allocation2] sm:$0x1] }
   0xa   :  { %44 = vperm.xlu0 %267, %v40_v6  }
   0xd   :  { %94 = vperm.xlu1 %268, %v90_v10  }
   0xe   :  { %260 = vmatmul.msk.f32.gmra.mxu0 %vm52_vm1, %v39_v7 }
   0xf   :  { %140 = vperm.xlu2 %269, %v136_v23  }
  0x12   :  { %221 = vperm.xlu0 %267, %v218_v8  }
  0x61   :  { %v146_v35 = vpop.permute.xlu2 %145 }
  0x69   :  { %v141_v40 = vpop.permute.xlu2 %140 }
  0x74   :  { %v50_v11 = vpop.permute.xlu0 %49 }
  0x77   :  { %v100_v22 = vpop.permute.xlu1 %99 }
  0x7c   :  { %v45_v13 = vpop.permute.xlu0 %44 }
  0x7f   :  { %v95_v25 = vpop.permute.xlu1 %94 }
  0x83   :  { %v80_v12 = vpop.f32.mrf.mxu0 }
  0x84   :  { %v81_v15 = vadd.f32 %v80_v12, %v45_v13  ;;  %v222_v34 = vpop.permute.xlu0 %221 }
  0x85   :  { %v224_v36 = vperm.slane %v222_v34, 0 }
  0x86   :  { %v86_v18 = vmax.f32 %v81_v15, 0.0 }
  0x8b   :  { %v83_v14 = vpop.f32.mrf.mxu0 }
  0x8c   :  { %v84_v16 = vadd.f32 %v83_v14, %v50_v11 }
  0x8e   :  { %v87_v17 = vmax.f32 %v84_v16, 0.0 }
  0x90   :  { %123 = vmatpush.msra.mxu1 %v87_v17 }
  0x92   :  { %124 = vmatpush.msra.mxu1 %v86_v18 }
  0x93   :  { %261 = vmatmul.msk.f32.vlgmr.msra.gmra.mxu1 %vm102_vm2, %v88_v19 }
  0x9b   :  { %262 = vmatmul.msk.f32.gmra.mxu1 %vm102_vm2, %v89_v20 }
 0x110   :  { %v126_v24 = vpop.f32.mrf.mxu1 }
 0x111   :  { %v127_v27 = vadd.f32 %v126_v24, %v95_v25 }
 0x113   :  { %v132_v30 = vmax.f32 %v127_v27, 0.0 }
 0x118   :  { %v129_v26 = vpop.f32.mrf.mxu1 }
 0x119   :  { %v130_v28 = vadd.f32 %v129_v26, %v100_v22 }
 0x11b   :  { %v133_v29 = vmax.f32 %v130_v28, 0.0 }
 0x11d   :  { %168 = vmatpush.msra.mxu2 %v133_v29  ;;  %242 = vmatpush.msra.mxu3 %v133_v29 }
 0x11f   :  { %169 = vmatpush.msra.mxu2 %v132_v30  ;;  %243 = vmatpush.msra.mxu3 %v132_v30 }
 0x120   :  { %263 = vmatmul.msk.f32.vlgmr.msra.gmra.mxu2 %vm102_vm2, %v134_v31  ;;  %265 = vmatmul.msk.f32.vlgmr.msra.gmra.mxu3 %vm102_vm2, %v217_v32 }
 0x128   :  { %264 = vmatmul.msk.f32.gmra.mxu2 %vm102_vm2, %v135_v33 }
 0x1a3   :  { %v171_v37 = vpop.f32.mrf.mxu2  ;;  %v245_v38 = vpop.f32.mrf.mxu3 }
 0x1a4   :  { %v246_v39 = vadd.f32 %v245_v38, %v224_v36  ;;  %v172_v44 = vadd.f32 %v171_v37, %v141_v40 }
 0x1a6   :  { %270 = vtanh.f32 %v246_v39 }
 0x1ab   :  { %v174_v41 = vpop.f32.mrf.mxu2 }
 0x1ac   :  { %v271_v42 = vpop.eup %270  ;;  %v175_v43 = vadd.f32 %v174_v41, %v146_v35 }
 0x1ad   :  { %249 = vst [vmem:[%s408_s10] sm:$0x1] %v271_v42 }
 0x1ae   :  { %v177_v45 = vsel %vm59_vm0, %v175_v43, -inf }
 0x1af   :  { %v178_v46 = vmax.f32 %v172_v44, %v177_v45 }
 0x1b1   :  { %v179_v47 = vrot.slane %v178_v46, 4 }
 0x1b3   :  { %v180_v48 = vmax.f32 %v178_v46, %v179_v47 }
 0x1b5   :  { %v181_v49 = vrot.slane %v180_v48, 2 }
 0x1b7   :  { %v182_v50 = vmax.f32 %v180_v48, %v181_v49 }
 0x1b9   :  { %v183_v51 = vrot.slane %v182_v50, 1 }
 0x1bb   :  { %v184_v52 = vmax.f32 %v182_v50, %v183_v51 }
 0x1bd   :  { %v185_v53 = vsub.f32 %v172_v44, %v184_v52  ;;  %v186_v54 = vsub.f32 %v175_v43, %v184_v52 }
 0x1bf   :  { %v187_v55 = vmul.f32 1.442695, %v185_v53  ;;  %v189_v56 = vmul.f32 1.442695, %v186_v54 }
 0x1c1   :  { %272 = vpow2.f32 %v187_v55 }
 0x1c2   :  { %274 = vpow2.f32 %v189_v56 }
 0x1c7   :  { %v273_v57 = vpop.eup %272 }
 0x1c8   :  { %v275_v58 = vpop.eup %274 }
 0x1c9   :  { %v191_v59 = vsel %vm59_vm0, %v275_v58, 0.0 }
 0x1ca   :  { %v192_v60 = vadd.f32 %v273_v57, %v191_v59 }
 0x1cc   :  { %v193_v61 = vrot.slane %v192_v60, 4 }
 0x1ce   :  { %v194_v62 = vadd.f32 %v193_v61, %v192_v60 }
 0x1d0   :  { %v195_v63 = vrot.slane %v194_v62, 2 }
 0x1d2   :  { %v196_v0 = vadd.f32 %v195_v63, %v194_v62 }
 0x1d4   :  { %v197_v1 = vrot.slane %v196_v0, 1 }
 0x1d6   :  { %v198_v2 = vadd.f32 %v197_v1, %v196_v0 }
 0x1d8   :  { %276 = vrcp.f32 %v198_v2  ;;  %v210_v6 = vand.u32 2147483648, %v198_v2  ;;  %v208_v8 = vand.u32 2147483647, %v198_v2  ;;  %vm204_vm4 = vweird.f32 %v198_v2 }
 0x1da   :  { %v211_v10 = vor.u32 1.1754944e-38, %v210_v6  ;;  %vm209_vm6 = vcmp.eq.f32.partialorder %v208_v8, 8.507059e+37 }
 0x1de   :  { %v277_v3 = vpop.eup %276 }
 0x1df   :  { %v200_v4 = vmul.f32 %v277_v3, %v198_v2  ;;  %vm205_vm3 = vweird.f32 %v277_v3 }
 0x1e0   :  { %vm206_vm5 = vmor %vm204_vm4, %vm205_vm3 }
 0x1e1   :  { %v201_v5 = vsub.f32 1.0, %v200_v4 }
 0x1e3   :  { %v202_v7 = vmul.f32 %v277_v3, %v201_v5 }
 0x1e5   :  { %v203_v9 = vadd.f32 %v277_v3, %v202_v7 }
 0x1e7   :  { %v207_v11 = vsel %vm206_vm5, %v277_v3, %v203_v9 }
 0x1e8   :  { %v212_v12 = vsel %vm209_vm6, %v211_v10, %v207_v11 }
 0x1e9   :  { %v213_v13 = vmul.f32 %v273_v57, %v212_v12  ;;  %v214_v14 = vmul.f32 %v275_v58, %v212_v12 }
 0x1eb   :  { %215 = vst [vmem:[%s409_s9] sm:$0xff] %v213_v13 }
 0x1ec   :  { %216 = vst [vmem:[%s409_s9 + $0x8] sm:$0x1] %v214_v14 }

</bundles_post_ra>
